<compile_context>
chip_gen: v5e
topology: v5e:2x2
jax: 0.10.0
libtpu: 0.0.40
codegen_flags: <defaults>
</compile_context>

<pallas_src>
import jax
import jax.numpy as jnp
from jax.experimental import pallas as pl
from jax.experimental.pallas import tpu as pltpu


def _layernorm_kernel(eps, n_feat):
    inv_nm1 = 1.0 / float(n_feat - 1) if n_feat > 1 else 1.0

    def kernel(x_ref, a_ref, b_ref, o_ref):
        x = x_ref[...].astype(jnp.float32)                    # (tr, F)
        mean = jnp.mean(x, axis=-1, keepdims=True)            # (tr, 1)
        d = x - mean
        # torch.std defaults to the unbiased estimator (divide by N-1).
        var = jnp.sum(d * d, axis=-1, keepdims=True) * inv_nm1
        std = jnp.sqrt(var)
        # One reciprocal per row (tr, 1); exact (not approx) so results match
        # the reference to ~1e-6.
        inv = 1.0 / (std + eps)
        a = a_ref[...]                                        # (1, F), f32
        b = b_ref[...]
        o_ref[...] = (a * (d * inv) + b).astype(o_ref.dtype)

    return kernel


def layer_norm_pallas(x, a_2, b_2, eps=1e-6, target_block_bytes=2 << 20):
    """x: (..., F) array; a_2, b_2: (F,) parameters."""
    orig_shape = x.shape
    feat = orig_shape[-1]
    x2 = x.reshape(-1, feat)                                  # (R, F) — metadata only
    rows = x2.shape[0]

    # ---- row-tile sizing (memory-bound: aim for ~2 MiB f32 blocks) --------
    bytes_per_row = feat * 4                                  # kernel computes in f32
    rt_cap = max(8, (target_block_bytes // bytes_per_row) // 8 * 8)
    if rows > 16:
        # keep >= 2 grid steps so the parallel axis can shard across 2 TCs (v7x)
        half = ((-(-rows // 2)) + 7) // 8 * 8
        rt_cap = min(rt_cap, half)

    if rows <= rt_cap:
        row_tile = rows          # full array dim — always a legal block shape
    else:
        row_tile = rt_cap        # multiple of 8; Pallas masks the partial tail
    grid_len = pl.cdiv(rows, row_tile)

    # Pre-cast params once in the wrapper so no per-step cast runs in the loop.
    a2 = a_2.astype(jnp.float32).reshape(1, feat)
    b2 = b_2.astype(jnp.float32).reshape(1, feat)

    out = pl.pallas_call(
        _layernorm_kernel(eps, feat),
        out_shape=jax.ShapeDtypeStruct((rows, feat), x.dtype),
        grid_spec=pltpu.PrefetchScalarGridSpec(
            num_scalar_prefetch=0,
            grid=(grid_len,),
            in_specs=[
                pl.BlockSpec((row_tile, feat), lambda i: (i, 0)),
                pl.BlockSpec((1, feat), lambda i: (0, 0)),
                pl.BlockSpec((1, feat), lambda i: (0, 0)),
            ],
            out_specs=pl.BlockSpec((row_tile, feat), lambda i: (i, 0)),
        ),
        compiler_params=pltpu.CompilerParams(
            dimension_semantics=("parallel",),
            vmem_limit_bytes=32 * 1024 * 1024,
        ),
    )(x2, a2, b2)

    return out.reshape(orig_shape)


def layer_norm_ref(x, a_2, b_2, eps=1e-6):
    """Pure-JAX reference mirroring the PyTorch forward exactly."""
    xf = x.astype(jnp.float32)
    mean = jnp.mean(xf, axis=-1, keepdims=True)
    var = jnp.sum((xf - mean) ** 2, axis=-1, keepdims=True) / (x.shape[-1] - 1)
    std = jnp.sqrt(var)
    return (a_2 * (xf - mean) / (std + eps) + b_2).astype(x.dtype)


if __name__ == "__main__":
    key = jax.random.PRNGKey(0)
    batch, seq, hidden = 2, 8, 32

    x = jax.random.normal(key, (batch, seq, hidden), dtype=jnp.float32)

    # Deterministic parameter init, matching nn.Parameter(torch.ones/zeros(features))
    a_2 = jnp.ones((hidden,), dtype=jnp.float32)
    b_2 = jnp.zeros((hidden,), dtype=jnp.float32)

    out = layer_norm_pallas(x, a_2, b_2)
    out = jax.block_until_ready(out)

    ref = layer_norm_ref(x, a_2, b_2)
    assert out.shape == x.shape
    assert jnp.allclose(out, ref, atol=1e-5, rtol=1e-5), "mismatch vs reference"

    print("KERNEL_OK")
</pallas_src>

<mosaic_0001>
module attributes {stable_mosaic.version = 11 : i64} {
  func.func @kernel(%arg0: i32, %arg1: memref<16x32xf32, #tpu.memory_space<vmem>>, %arg2: memref<1x32xf32, #tpu.memory_space<vmem>>, %arg3: memref<1x32xf32, #tpu.memory_space<vmem>>, %arg4: memref<16x32xf32, #tpu.memory_space<vmem>>) attributes {dimension_semantics = [#tpu.dimension_semantics<parallel>], iteration_bounds = array<i64: 1>, scalar_prefetch = 0 : i64, scratch_operands = 0 : i64, tpu.core_type = #tpu.core_type<tc>, window_params = [{transform_indices = @transform_0, window_bounds = array<i64: 16, 32>}, {pipeline_mode = #tpu.pipeline_mode<synchronous>, transform_indices = @transform_1, window_bounds = array<i64: 1, 32>}, {pipeline_mode = #tpu.pipeline_mode<synchronous>, transform_indices = @transform_2, window_bounds = array<i64: 1, 32>}, {transform_indices = @transform_3, window_bounds = array<i64: 16, 32>}]} {
    %c0 = arith.constant 0 : index
    %c0_0 = arith.constant 0 : index
    %0 = vector.load %arg1[%c0, %c0_0] : memref<16x32xf32, #tpu.memory_space<vmem>>, vector<16x32xf32>
    %cst = arith.constant dense<0.000000e+00> : vector<16xf32>
    %1 = vector.multi_reduction <add>, %0, %cst [1] : vector<16x32xf32> to vector<16xf32>
    %2 = vector.shape_cast %1 : vector<16xf32> to vector<16x1xf32>
    %cst_1 = arith.constant 3.200000e+01 : f32
    %3 = vector.broadcast %cst_1 : f32 to vector<16x1xf32>
    %4 = arith.divf %2, %3 : vector<16x1xf32>
    %5 = vector.broadcast %4 : vector<16x1xf32> to vector<16x32xf32>
    %6 = arith.subf %0, %5 : vector<16x32xf32>
    %7 = arith.mulf %6, %6 : vector<16x32xf32>
    %cst_2 = arith.constant dense<0.000000e+00> : vector<16xf32>
    %8 = vector.multi_reduction <add>, %7, %cst_2 [1] : vector<16x32xf32> to vector<16xf32>
    %9 = vector.shape_cast %8 : vector<16xf32> to vector<16x1xf32>
    %cst_3 = arith.constant 0.0322580636 : f32
    %10 = vector.broadcast %cst_3 : f32 to vector<16x1xf32>
    %11 = arith.mulf %9, %10 : vector<16x1xf32>
    %12 = math.sqrt %11 : vector<16x1xf32>
    %cst_4 = arith.constant 9.99999997E-7 : f32
    %13 = vector.broadcast %cst_4 : f32 to vector<16x1xf32>
    %14 = arith.addf %12, %13 : vector<16x1xf32>
    %cst_5 = arith.constant 1.000000e+00 : f32
    %15 = vector.broadcast %cst_5 : f32 to vector<16x1xf32>
    %16 = arith.divf %15, %14 : vector<16x1xf32>
    %c0_6 = arith.constant 0 : index
    %c0_7 = arith.constant 0 : index
    %17 = vector.load %arg2[%c0_6, %c0_7] : memref<1x32xf32, #tpu.memory_space<vmem>>, vector<1x32xf32>
    %c0_8 = arith.constant 0 : index
    %c0_9 = arith.constant 0 : index
    %18 = vector.load %arg3[%c0_8, %c0_9] : memref<1x32xf32, #tpu.memory_space<vmem>>, vector<1x32xf32>
    %19 = vector.broadcast %16 : vector<16x1xf32> to vector<16x32xf32>
    %20 = arith.mulf %6, %19 : vector<16x32xf32>
    %21 = vector.broadcast %17 : vector<1x32xf32> to vector<16x32xf32>
    %22 = arith.mulf %21, %20 : vector<16x32xf32>
    %23 = vector.broadcast %18 : vector<1x32xf32> to vector<16x32xf32>
    %24 = arith.addf %22, %23 : vector<16x32xf32>
    %c0_10 = arith.constant 0 : index
    %c0_11 = arith.constant 0 : index
    %25 = vector.load %arg4[%c0_10, %c0_11] : memref<16x32xf32, #tpu.memory_space<vmem>>, vector<16x32xf32>
    tpu.vector_store %arg4[%c0_10, %c0_11], %24 {strides = array<i32>} : memref<16x32xf32, #tpu.memory_space<vmem>>, vector<16x32xf32>,
    return
  }
  func.func @transform_0(%arg0: i32) -> (i32, i32) {
    %c0_i32 = arith.constant 0 : i32
    %c0_i32_0 = arith.constant 0 : i32
    return %arg0, %c0_i32 : i32, i32
  }
  func.func @transform_1(%arg0: i32) -> (i32, i32) {
    %c0_i32 = arith.constant 0 : i32
    %c0_i32_0 = arith.constant 0 : i32
    %c0_i32_1 = arith.constant 0 : i32
    return %c0_i32, %c0_i32_0 : i32, i32
  }
  func.func @transform_2(%arg0: i32) -> (i32, i32) {
    %c0_i32 = arith.constant 0 : i32
    %c0_i32_0 = arith.constant 0 : i32
    %c0_i32_1 = arith.constant 0 : i32
    return %c0_i32, %c0_i32_0 : i32, i32
  }
  func.func @transform_3(%arg0: i32) -> (i32, i32) {
    %c0_i32 = arith.constant 0 : i32
    %c0_i32_0 = arith.constant 0 : i32
    return %arg0, %c0_i32 : i32, i32
  }
}

</mosaic_0001>

<bundles_post_ra>
// kernel: tpu_custom_call.1
= control target key start
LH: loop header
LB: loop body
LE: loop exit
PB: predicated region body
PF: predicated region fallthrough
CT: control target
= control target key end

     0   :  { %8 = vsyncpa [#allocation3], 0  ;;  %s318_s0 = inlined_call_operand.hbm [shape: f32[16,32], index: 0, kind: input, shape index: {}]   ;;  %s319_s1 = inlined_call_operand.hbm [shape: f32[1,32], index: 1, kind: input, shape index: {}]   ;;  %s320_s2 = inlined_call_operand.vmem [shape: f32[1,32], index: 2, kind: input, shape index: {}]   ;;  %s321_s3 = inlined_call_operand.hbm [shape: f32[16,32], index: 3, kind: output, shape index: {}]  }
   0x1   :  { %9 = vsyncpa [#allocation6], 0 }
   0x2   :  { %10 = vsyncpa [#allocation4], 0  ;;  %s15_s14 = sshll.u32 %s318_s0, 4  ;;  %s263_s15 = smov [#allocation2]   ;;  %s16_s14 = int_to_ptr.hbm [resolvable:$true] %s15_s14 }
   0x3   :  { %s17_s16 = sshll.u32 %s263_s15, 4  ;;  %s29_s19 = sshll.u32 %s319_s1, 4  ;;  %s18_s16 = int_to_ptr.vmem [resolvable:$true] %s17_s16  ;;  %s30_s19 = int_to_ptr.hbm [resolvable:$true] %s29_s19 }
   0x4   :  { %s264_s20 = smov 128   ;;  %s265_s21 = smov 8  }
   0x5   :  { %23 = dma.hbm_to_vmem [thread:$0]  %s16_s14, 256, %s18_s16, [#allocation3], %s264_s20, %s264_s20, %s265_s21  }
   0x6   :  { %s266_s22 = smov [#allocation5]  }
   0x7   :  { %s31_s23 = sshll.u32 %s266_s22, 4  ;;  %s32_s23 = int_to_ptr.vmem [resolvable:$true] %s31_s23 }
   0x8   :  { %34 = dma.hbm_to_vmem [thread:$0]  %s30_s19, 16, %s32_s23, [#allocation6]  }
   0x9   :  { %257 = dma.done.wait [#allocation3], 256  }
   0xa   :  { %258 = vsyncadd [#allocation3], 4294967040 }
   0xb   :  { %259 = dma.done.wait [#allocation6], 16  }
   0xc   :  { %260 = vsyncadd [#allocation6], 4294967280  ;;  %vm47_vm0 = vcmask 261120   ;;  %v45_v0 = vld [vmem:[#allocation2] sm:$0xff]  ;;  %v46_v2 = vld [vmem:[#allocation2 + $0x8] sm:$0xff]  ;;  %v267_v4 = vmov 32.0  }
   0xd   :  { %v48_v1 = vsel %vm47_vm0, %v45_v0, 0.0  ;;  %v51_v3 = vsel %vm47_vm0, %v46_v2, 0.0  ;;  %175 = vrcp.f32 %v267_v4  ;;  %v173_v58 = vld [vmem:[#allocation5] ss:$0 sm:$0xff]  ;;  %v174_v62 = vld [vmem:[%s320_s2] ss:$0 sm:$0xff] }
   0xe   :  { %49 = vadd.xlane.f32.xlu0 %v48_v1  ;;  %s268_s24 = smov [#allocation7]   ;;  %s153_s27 = sshll.u32 %s321_s3, 4  ;;  %s154_s27 = int_to_ptr.hbm [resolvable:$true] %s153_s27 }
   0xf   :  { %s151_s25 = sshll.u32 %s268_s24, 4  ;;  %s152_s25 = int_to_ptr.vmem [resolvable:$true] %s151_s25 }
  0x13   :  { %v176_v5 = vpop.eup %175 }
  0x14   :  { %v55_v6 = vmul.f32 32.0, %v176_v5  ;;  %vm59_vm1 = vweird.f32 %v176_v5 }
  0x16   :  { %52 = vadd.xlane.f32.xlu0 %v51_v3  ;;  %v56_v7 = vsub.f32 1.0, %v55_v6 }
  0x18   :  { %v57_v8 = vmul.f32 %v176_v5, %v56_v7 }
  0x1a   :  { %v58_v9 = vadd.f32 %v176_v5, %v57_v8 }
  0x1c   :  { %v60_v10 = vsel %vm59_vm1, %v176_v5, %v58_v9 }
  0x81   :  { %v50_v11 = vpop.xlane.xlu0 %49 }
  0x82   :  { %v61_v12 = vmul.f32 %v60_v10, %v50_v11 }
  0x84   :  { %v63_v13 = vsub.f32 %v45_v0, %v61_v12 }
  0x86   :  { %v65_v14 = vmul.f32 %v63_v13, %v63_v13 }
  0x88   :  { %v67_v15 = vsel %vm47_vm0, %v65_v14, 0.0 }
  0x89   :  { %68 = vadd.xlane.f32.xlu1 %v67_v15  ;;  %v53_v16 = vpop.xlane.xlu0 %52 }
  0x8a   :  { %v62_v17 = vmul.f32 %v60_v10, %v53_v16 }
  0x8c   :  { %v301_v18 = vsub.f32 %v46_v2, %v62_v17 }
  0x8e   :  { %v66_v19 = vmul.f32 %v301_v18, %v301_v18 }
  0x90   :  { %v70_v20 = vsel %vm47_vm0, %v66_v19, 0.0 }
  0x91   :  { %71 = vadd.xlane.f32.xlu1 %v70_v20 }
  0xfc   :  { %v69_v21 = vpop.xlane.xlu1 %68 }
  0xfd   :  { %v73_v22 = vmul.f32 0.032258064, %v69_v21 }
  0xff   :  { %177 = vrsqrt.f32 %v73_v22  ;;  %vm82_vm2 = vcmp.eq.f32.partialorder %v73_v22, inf  ;;  %v85_v35 = vand.u32 2147483648, %v73_v22  ;;  %vm84_vm3 = vcmp.eq.f32.partialorder %v73_v22, 0.0 }
 0x104   :  { %v72_v23 = vpop.xlane.xlu1 %71 }
 0x105   :  { %v178_v24 = vpop.eup %177  ;;  %v74_v25 = vmul.f32 0.032258064, %v72_v23 }
 0x106   :  { %v76_v26 = vmul.f32 %v178_v24, %v73_v22 }
 0x107   :  { %179 = vrsqrt.f32 %v74_v25  ;;  %vm94_vm4 = vcmp.eq.f32.partialorder %v74_v25, inf  ;;  %v97_v43 = vand.u32 2147483648, %v74_v25  ;;  %vm96_vm5 = vcmp.eq.f32.partialorder %v74_v25, 0.0 }
 0x108   :  { %v77_v27 = vmul.f32 %v178_v24, %v76_v26 }
 0x10a   :  { %v78_v28 = vmul.f32 0.5, %v77_v27 }
 0x10c   :  { %v79_v29 = vsub.f32 1.5, %v78_v28 }
 0x10d   :  { %v180_v30 = vpop.eup %179 }
 0x10e   :  { %v80_v31 = vmul.f32 %v178_v24, %v79_v29  ;;  %v88_v32 = vmul.f32 %v180_v30, %v74_v25 }
 0x110   :  { %v81_v33 = vmul.f32 %v80_v31, %v73_v22  ;;  %v89_v34 = vmul.f32 %v180_v30, %v88_v32 }
 0x112   :  { %v83_v36 = vsel %vm82_vm2, %v73_v22, %v81_v33  ;;  %v90_v37 = vmul.f32 0.5, %v89_v34 }
 0x113   :  { %v86_v38 = vsel %vm84_vm3, %v85_v35, %v83_v36 }
 0x114   :  { %v99_v39 = vadd.f32 1e-06, %v86_v38  ;;  %v91_v40 = vsub.f32 1.5, %v90_v37 }
 0x116   :  { %181 = vrcp.f32 %v99_v39  ;;  %v92_v41 = vmul.f32 %v180_v30, %v91_v40  ;;  %v112_v50 = vand.u32 2147483648, %v99_v39  ;;  %v110_v52 = vand.u32 2147483647, %v99_v39 }
 0x117   :  { %vm106_vm7 = vweird.f32 %v99_v39 }
 0x118   :  { %v93_v42 = vmul.f32 %v92_v41, %v74_v25  ;;  %v113_v55 = vor.u32 1.1754944e-38, %v112_v50  ;;  %vm111_vm9 = vcmp.eq.f32.partialorder %v110_v52, 8.507059e+37 }
 0x11a   :  { %v95_v44 = vsel %vm94_vm4, %v74_v25, %v93_v42 }
 0x11b   :  { %v98_v45 = vsel %vm96_vm5, %v97_v43, %v95_v44 }
 0x11c   :  { %v182_v46 = vpop.eup %181  ;;  %v100_v47 = vadd.f32 1e-06, %v98_v45 }
 0x11d   :  { %v102_v48 = vmul.f32 %v182_v46, %v99_v39  ;;  %vm107_vm6 = vweird.f32 %v182_v46 }
 0x11e   :  { %183 = vrcp.f32 %v100_v47  ;;  %vm108_vm8 = vmor %vm106_vm7, %vm107_vm6  ;;  %v127_v63 = vand.u32 2147483648, %v100_v47  ;;  %v125_v1 = vand.u32 2147483647, %v100_v47  ;;  %vm121_vm11 = vweird.f32 %v100_v47 }
 0x11f   :  { %v103_v49 = vsub.f32 1.0, %v102_v48 }
 0x120   :  { %v128_v5 = vor.u32 1.1754944e-38, %v127_v63  ;;  %vm126_vm13 = vcmp.eq.f32.partialorder %v125_v1, 8.507059e+37 }
 0x121   :  { %v104_v51 = vmul.f32 %v182_v46, %v103_v49 }
 0x123   :  { %v105_v53 = vadd.f32 %v182_v46, %v104_v51 }
 0x124   :  { %v184_v54 = vpop.eup %183 }
 0x125   :  { %v109_v56 = vsel %vm108_vm8, %v182_v46, %v105_v53  ;;  %v117_v57 = vmul.f32 %v184_v54, %v100_v47  ;;  %vm122_vm10 = vweird.f32 %v184_v54 }
 0x126   :  { %v114_v59 = vsel %vm111_vm9, %v113_v55, %v109_v56  ;;  %vm123_vm12 = vmor %vm121_vm11, %vm122_vm10 }
 0x127   :  { %v118_v60 = vsub.f32 1.0, %v117_v57  ;;  %v133_v61 = vmul.f32 %v114_v59, %v63_v13 }
 0x129   :  { %v119_v0 = vmul.f32 %v184_v54, %v118_v60  ;;  %v138_v2 = vmul.f32 %v173_v58, %v133_v61 }
 0x12b   :  { %v120_v3 = vadd.f32 %v184_v54, %v119_v0  ;;  %v143_v4 = vadd.f32 %v174_v62, %v138_v2 }
 0x12d   :  { %v124_v6 = vsel %vm123_vm12, %v184_v54, %v120_v3  ;;  %145 = vst.msk [vmem:[#allocation7] sm:$0xff] %vm47_vm0, %v143_v4 }
 0x12e   :  { %v129_v7 = vsel %vm126_vm13, %v128_v5, %v124_v6 }
 0x12f   :  { %v134_v8 = vmul.f32 %v129_v7, %v301_v18 }
 0x131   :  { %v139_v9 = vmul.f32 %v173_v58, %v134_v8 }
 0x133   :  { %v144_v10 = vadd.f32 %v174_v62, %v139_v9 }
 0x135   :  { %146 = vst.msk [vmem:[#allocation7 + $0x8] sm:$0xff] %vm47_vm0, %v144_v10 }
 0x136   :  { %159 = dma.vmem_to_hbm [thread:$0]  %s152_s25, 256, %s154_s27, [#allocation4], %s264_s20, %s264_s20, %s265_s21  }
 0x137   :  { %261 = dma.done.wait [#allocation4], 256  }
 0x138   :  { %262 = vsyncadd [#allocation4], 4294967040 }
 0x139   :  { %164 = vsyncpa [#allocation3], 1 }
 0x13a   :  { %165 = vsyncpa [#allocation6], 1 }
 0x13b   :  { %166 = vsyncpa [#allocation4], 1 }

</bundles_post_ra>
